<compile_context>
chip_gen: v6e
topology: v6e:2x2x1
jax: 0.10.0
libtpu: 0.0.40
codegen_flags: <defaults>
</compile_context>

<pallas_src>
import functools

import jax
import jax.numpy as jnp
from jax.experimental import pallas as pl
from jax.experimental.pallas import tpu as pltpu

_LANES = 128
_SUBLANES = 8
# Per-input block cap in rows: 8192 rows -> 4 MiB f32 working set per block.
# 2 inputs x 2 pipeline buffers (stored dtype) stay <= 16 MiB, well inside the
# scoped-VMEM limit requested below (v5e default is only 16 MiB, hence the
# explicit limit; 48 MiB is under every generation's physical VMEM).
_MAX_BLOCK_ROWS = 8192
_NUM_CORES = 2                       # "parallel" leading axis: ~2x on v7x
_VMEM_LIMIT_BYTES = 48 * 1024 * 1024


def _tversky_partial_kernel(x_ref, t_ref, part_ref,
                            tp_acc, sx_acc, st_acc, *,
                            activation, block_rows, blocks_per_core,
                            rows_main):
    c = pl.program_id(0)          # core (parallel) axis
    i = pl.program_id(1)          # streaming / reduction (arbitrary) axis

    @pl.when(i == 0)
    def _init():
        tp_acc[...] = jnp.zeros_like(tp_acc)
        sx_acc[...] = jnp.zeros_like(sx_acc)
        st_acc[...] = jnp.zeros_like(st_acc)

    # Global block position, in row units only (int32-safe for huge n).
    block_start_row = (c * blocks_per_core + i) * block_rows
    groups = block_rows // _SUBLANES

    def _load():
        x = x_ref[...].astype(jnp.float32)
        t = t_ref[...].astype(jnp.float32)
        if activation:
            # Exact sigmoid (EUP exp + true divide) to match the PyTorch
            # reference; approx reciprocal was flagged as diverging.
            x = 1.0 / (1.0 + jnp.exp(-x))
        return x, t

    def _accumulate(x, t):
        # (block_rows,128) -> (groups,8,128): minor dims match the vreg tile,
        # so the axis-0 reduce is pure vreg-wise VALU adds into the (8,128)
        # accumulators; no per-step cross-lane/sublane (XLU) work.
        x3 = x.reshape(groups, _SUBLANES, _LANES)
        t3 = t.reshape(groups, _SUBLANES, _LANES)
        tp_acc[...] += jnp.sum(x3 * t3, axis=0)
        sx_acc[...] += jnp.sum(x3, axis=0)
        st_acc[...] += jnp.sum(t3, axis=0)

    # Steady state: block fully inside the valid row range -> no masking.
    @pl.when(block_start_row + block_rows <= rows_main)
    def _full():
        x, t = _load()
        _accumulate(x, t)

    # Boundary block (at most one per core): mask rows past the end.
    @pl.when(jnp.logical_and(block_start_row < rows_main,
                             block_start_row + block_rows > rows_main))
    def _tail():
        x, t = _load()
        row_ids = jax.lax.broadcasted_iota(
            jnp.int32, (block_rows, _LANES), 0)
        valid = (block_start_row + row_ids) < rows_main
        _accumulate(jnp.where(valid, x, 0.0), jnp.where(valid, t, 0.0))

    # Blocks entirely past the end (grid padding from the 2-core split)
    # contribute nothing and are skipped.

    @pl.when(i == blocks_per_core - 1)
    def _finalize():
        part_ref[0, 0] = tp_acc[...]
        part_ref[0, 1] = sx_acc[...]
        part_ref[0, 2] = st_acc[...]


def tversky_loss(inputs, targets, *, alpha=0.5, beta=0.5, smooth=1.0,
                 activation=False, max_block_rows=_MAX_BLOCK_ROWS):
    """Matches TverskyLoss.forward: (optional sigmoid) -> flatten -> 1 - Tversky."""
    x = jnp.reshape(inputs, (-1,))
    t = jnp.reshape(targets, (-1,))
    n = x.shape[0]

    # Kernel region: whole (8,128)=1024-element units (keeps every block a
    # multiple of 8 rows); the <1024-element ragged tail is handled with plain
    # jnp below -- no full-array jnp.pad / copy.
    rows_main = (n // (_SUBLANES * _LANES)) * _SUBLANES
    n_main = rows_main * _LANES

    if n_main != n:
        xr = x[n_main:].astype(jnp.float32)
        tr = t[n_main:].astype(jnp.float32)
        if activation:
            xr = 1.0 / (1.0 + jnp.exp(-xr))
        tp_rem = jnp.sum(xr * tr)
        sx_rem = jnp.sum(xr)
        st_rem = jnp.sum(tr)
    else:
        tp_rem = sx_rem = st_rem = jnp.float32(0.0)

    if rows_main == 0:
        tp, sx, st = tp_rem, sx_rem, st_rem
    else:
        if n_main != n:
            xk = x[:n_main]
            tk = t[:n_main]
        else:
            xk, tk = x, t
        x2 = xk.reshape(rows_main, _LANES)   # free bitcast (no dtype change)
        t2 = tk.reshape(rows_main, _LANES)

        max_rows = max(_SUBLANES, (int(max_block_rows) // _SUBLANES) * _SUBLANES)
        block_rows = min(max_rows, rows_main)          # multiple of 8
        total_blocks = pl.cdiv(rows_main, block_rows)
        blocks_per_core = pl.cdiv(total_blocks, _NUM_CORES)
        max_block = total_blocks - 1
        grid = (_NUM_CORES, blocks_per_core)

        kernel = functools.partial(
            _tversky_partial_kernel,
            activation=bool(activation),
            block_rows=int(block_rows),
            blocks_per_core=int(blocks_per_core),
            rows_main=int(rows_main))

        def in_map(c, i):
            # Clamp grid-padding blocks (from the core split) to a legal block
            # index; the kernel skips their contribution anyway.
            return (jnp.minimum(c * blocks_per_core + i, max_block), 0)

        cost = pl.CostEstimate(
            flops=int(4 * n),
            transcendentals=int(n if activation else 0),
            bytes_accessed=int(n) * (x.dtype.itemsize + t.dtype.itemsize))

        partials = pl.pallas_call(
            kernel,
            out_shape=jax.ShapeDtypeStruct(
                (_NUM_CORES, 3, _SUBLANES, _LANES), jnp.float32),
            grid_spec=pltpu.PrefetchScalarGridSpec(
                num_scalar_prefetch=0,
                grid=grid,
                in_specs=[
                    pl.BlockSpec((block_rows, _LANES), in_map),
                    pl.BlockSpec((block_rows, _LANES), in_map),
                ],
                out_specs=pl.BlockSpec((1, 3, _SUBLANES, _LANES),
                                       lambda c, i: (c, 0, 0, 0)),
                scratch_shapes=[
                    pltpu.VMEM((_SUBLANES, _LANES), jnp.float32),
                    pltpu.VMEM((_SUBLANES, _LANES), jnp.float32),
                    pltpu.VMEM((_SUBLANES, _LANES), jnp.float32),
                ],
            ),
            compiler_params=pltpu.CompilerParams(
                dimension_semantics=("parallel", "arbitrary"),
                vmem_limit_bytes=_VMEM_LIMIT_BYTES),
            cost_estimate=cost,
        )(x2, t2)

        sums = jnp.sum(partials, axis=(0, 2, 3))   # (3,): [tp, sx, st]
        tp = sums[0] + tp_rem
        sx = sums[1] + sx_rem
        st = sums[2] + st_rem

    # fp = sum((1-t)*x) = sx - tp ;  fn = sum(t*(1-x)) = st - tp
    fp = sx - tp
    fn = st - tp
    tversky = (tp + smooth) / (tp + alpha * fp + beta * fn + smooth)
    return (1.0 - tversky).astype(jnp.float32)


def _reference(inputs, targets, *, alpha=0.5, beta=0.5, smooth=1.0,
               activation=False):
    x = jnp.reshape(inputs, (-1,)).astype(jnp.float32)
    t = jnp.reshape(targets, (-1,)).astype(jnp.float32)
    if activation:
        x = jax.nn.sigmoid(x)
    tp = jnp.sum(x * t)
    fp = jnp.sum((1.0 - t) * x)
    fn = jnp.sum(t * (1.0 - x))
    tversky = (tp + smooth) / (tp + alpha * fp + beta * fn + smooth)
    return 1.0 - tversky


if __name__ == "__main__":
    key = jax.random.PRNGKey(0)
    k1, k2, k3, k4 = jax.random.split(key, 4)

    # 1) NCHW probabilities + binary targets (as the PyTorch module expects).
    shape = (2, 4, 16, 16)
    inputs = jax.random.uniform(k1, shape, dtype=jnp.float32)
    targets = (jax.random.uniform(k2, shape) > 0.5).astype(jnp.float32)
    loss = tversky_loss(inputs, targets, alpha=0.5, beta=0.5, smooth=1.0,
                        activation=False)
    loss = jax.block_until_ready(loss)
    ref = _reference(inputs, targets, alpha=0.5, beta=0.5, smooth=1.0,
                     activation=False)
    assert jnp.allclose(loss, ref, rtol=1e-5, atol=1e-6), (loss, ref)

    # 2) Logits path with sigmoid, a lane-unaligned shape, and a small forced
    #    block size so the multi-block / masked-tail / padded-block paths of
    #    the kernel are exercised at test scale.
    shape2 = (2, 3, 33, 37)
    logits = jax.random.normal(k3, shape2, dtype=jnp.float32)
    targets2 = (jax.random.uniform(k4, shape2) > 0.5).astype(jnp.float32)
    loss2 = tversky_loss(logits, targets2, alpha=0.7, beta=0.3, smooth=1.0,
                         activation=True, max_block_rows=24)
    loss2 = jax.block_until_ready(loss2)
    ref2 = _reference(logits, targets2, alpha=0.7, beta=0.3, smooth=1.0,
                      activation=True)
    assert jnp.allclose(loss2, ref2, rtol=1e-4, atol=1e-5), (loss2, ref2)

    print("KERNEL_OK")
</pallas_src>

<mosaic_0001>
module attributes {stable_mosaic.version = 11 : i64} {
  func.func @_tversky_partial_kernel(%arg0: i32, %arg1: i32, %arg2: memref<16x128xf32, #tpu.memory_space<vmem>>, %arg3: memref<16x128xf32, #tpu.memory_space<vmem>>, %arg4: memref<1x3x8x128xf32, #tpu.memory_space<vmem>>, %arg5: memref<8x128xf32, #tpu.memory_space<vmem>>, %arg6: memref<8x128xf32, #tpu.memory_space<vmem>>, %arg7: memref<8x128xf32, #tpu.memory_space<vmem>>) attributes {dimension_semantics = [#tpu.dimension_semantics<parallel>, #tpu.dimension_semantics<arbitrary>], iteration_bounds = array<i64: 2, 1>, scalar_prefetch = 0 : i64, scratch_operands = 3 : i64, tpu.core_type = #tpu.core_type<tc>, window_params = [{transform_indices = @transform_0, window_bounds = array<i64: 16, 128>}, {transform_indices = @transform_1, window_bounds = array<i64: 16, 128>}, {transform_indices = @transform_2, window_bounds = array<i64: 1, 3, 8, 128>}]} {
    %c0_i32 = arith.constant 0 : i32
    %0 = arith.cmpi eq, %arg1, %c0_i32 : i32
    %1 = arith.extui %0 : i1 to i32
    %c0_i32_0 = arith.constant 0 : i32
    %2 = arith.cmpi ne, %1, %c0_i32_0 : i32
    scf.if %2 {
      %cst = arith.constant 0.000000e+00 : f32
      %19 = vector.broadcast %cst : f32 to vector<8x128xf32>
      %c0 = arith.constant 0 : index
      %c0_10 = arith.constant 0 : index
      %20 = vector.load %arg5[%c0, %c0_10] : memref<8x128xf32, #tpu.memory_space<vmem>>, vector<8x128xf32>
      tpu.vector_store %arg5[%c0, %c0_10], %19 {strides = array<i32>} : memref<8x128xf32, #tpu.memory_space<vmem>>, vector<8x128xf32>,
      %cst_11 = arith.constant 0.000000e+00 : f32
      %21 = vector.broadcast %cst_11 : f32 to vector<8x128xf32>
      %c0_12 = arith.constant 0 : index
      %c0_13 = arith.constant 0 : index
      %22 = vector.load %arg6[%c0_12, %c0_13] : memref<8x128xf32, #tpu.memory_space<vmem>>, vector<8x128xf32>
      tpu.vector_store %arg6[%c0_12, %c0_13], %21 {strides = array<i32>} : memref<8x128xf32, #tpu.memory_space<vmem>>, vector<8x128xf32>,
      %cst_14 = arith.constant 0.000000e+00 : f32
      %23 = vector.broadcast %cst_14 : f32 to vector<8x128xf32>
      %c0_15 = arith.constant 0 : index
      %c0_16 = arith.constant 0 : index
      %24 = vector.load %arg7[%c0_15, %c0_16] : memref<8x128xf32, #tpu.memory_space<vmem>>, vector<8x128xf32>
      tpu.vector_store %arg7[%c0_15, %c0_16], %23 {strides = array<i32>} : memref<8x128xf32, #tpu.memory_space<vmem>>, vector<8x128xf32>,
    } else {
    }
    %c1_i32 = arith.constant 1 : i32
    %3 = arith.muli %arg0, %c1_i32 : i32
    %4 = arith.addi %3, %arg1 : i32
    %c16_i32 = arith.constant 16 : i32
    %5 = arith.muli %4, %c16_i32 : i32
    %c16_i32_1 = arith.constant 16 : i32
    %6 = arith.addi %5, %c16_i32_1 : i32
    %c16_i32_2 = arith.constant 16 : i32
    %7 = arith.cmpi sle, %6, %c16_i32_2 : i32
    %8 = arith.extui %7 : i1 to i32
    %c0_i32_3 = arith.constant 0 : i32
    %9 = arith.cmpi ne, %8, %c0_i32_3 : i32
    scf.if %9 {
      %c0 = arith.constant 0 : index
      %c0_10 = arith.constant 0 : index
      %19 = vector.load %arg2[%c0, %c0_10] : memref<16x128xf32, #tpu.memory_space<vmem>>, vector<16x128xf32>
      %c0_11 = arith.constant 0 : index
      %c0_12 = arith.constant 0 : index
      %20 = vector.load %arg3[%c0_11, %c0_12] : memref<16x128xf32, #tpu.memory_space<vmem>>, vector<16x128xf32>
      %21 = vector.shape_cast %19 : vector<16x128xf32> to vector<2x8x128xf32>
      %22 = vector.shape_cast %20 : vector<16x128xf32> to vector<2x8x128xf32>
      %c0_13 = arith.constant 0 : index
      %c0_14 = arith.constant 0 : index
      %23 = vector.load %arg5[%c0_13, %c0_14] : memref<8x128xf32, #tpu.memory_space<vmem>>, vector<8x128xf32>
      %24 = arith.mulf %21, %22 : vector<2x8x128xf32>
      %cst = arith.constant dense<0.000000e+00> : vector<8x128xf32>
      %25 = vector.multi_reduction <add>, %24, %cst [0] : vector<2x8x128xf32> to vector<8x128xf32>
      %26 = arith.addf %23, %25 : vector<8x128xf32>
      %c0_15 = arith.constant 0 : index
      %c0_16 = arith.constant 0 : index
      %27 = vector.load %arg5[%c0_15, %c0_16] : memref<8x128xf32, #tpu.memory_space<vmem>>, vector<8x128xf32>
      tpu.vector_store %arg5[%c0_15, %c0_16], %26 {strides = array<i32>} : memref<8x128xf32, #tpu.memory_space<vmem>>, vector<8x128xf32>,
      %c0_17 = arith.constant 0 : index
      %c0_18 = arith.constant 0 : index
      %28 = vector.load %arg6[%c0_17, %c0_18] : memref<8x128xf32, #tpu.memory_space<vmem>>, vector<8x128xf32>
      %cst_19 = arith.constant dense<0.000000e+00> : vector<8x128xf32>
      %29 = vector.multi_reduction <add>, %21, %cst_19 [0] : vector<2x8x128xf32> to vector<8x128xf32>
      %30 = arith.addf %28, %29 : vector<8x128xf32>
      %c0_20 = arith.constant 0 : index
      %c0_21 = arith.constant 0 : index
      %31 = vector.load %arg6[%c0_20, %c0_21] : memref<8x128xf32, #tpu.memory_space<vmem>>, vector<8x128xf32>
      tpu.vector_store %arg6[%c0_20, %c0_21], %30 {strides = array<i32>} : memref<8x128xf32, #tpu.memory_space<vmem>>, vector<8x128xf32>,
      %c0_22 = arith.constant 0 : index
      %c0_23 = arith.constant 0 : index
      %32 = vector.load %arg7[%c0_22, %c0_23] : memref<8x128xf32, #tpu.memory_space<vmem>>, vector<8x128xf32>
      %cst_24 = arith.constant dense<0.000000e+00> : vector<8x128xf32>
      %33 = vector.multi_reduction <add>, %22, %cst_24 [0] : vector<2x8x128xf32> to vector<8x128xf32>
      %34 = arith.addf %32, %33 : vector<8x128xf32>
      %c0_25 = arith.constant 0 : index
      %c0_26 = arith.constant 0 : index
      %35 = vector.load %arg7[%c0_25, %c0_26] : memref<8x128xf32, #tpu.memory_space<vmem>>, vector<8x128xf32>
      tpu.vector_store %arg7[%c0_25, %c0_26], %34 {strides = array<i32>} : memref<8x128xf32, #tpu.memory_space<vmem>>, vector<8x128xf32>,
    } else {
    }
    %c16_i32_4 = arith.constant 16 : i32
    %10 = arith.cmpi slt, %5, %c16_i32_4 : i32
    %c16_i32_5 = arith.constant 16 : i32
    %11 = arith.addi %5, %c16_i32_5 : i32
    %c16_i32_6 = arith.constant 16 : i32
    %12 = arith.cmpi sgt, %11, %c16_i32_6 : i32
    %13 = arith.andi %10, %12 : i1
    %14 = arith.extui %13 : i1 to i32
    %c0_i32_7 = arith.constant 0 : i32
    %15 = arith.cmpi ne, %14, %c0_i32_7 : i32
    scf.if %15 {
      %c0 = arith.constant 0 : index
      %c0_10 = arith.constant 0 : index
      %19 = vector.load %arg2[%c0, %c0_10] : memref<16x128xf32, #tpu.memory_space<vmem>>, vector<16x128xf32>
      %c0_11 = arith.constant 0 : index
      %c0_12 = arith.constant 0 : index
      %20 = vector.load %arg3[%c0_11, %c0_12] : memref<16x128xf32, #tpu.memory_space<vmem>>, vector<16x128xf32>
      %21 = tpu.iota {dimensions = array<i32: 0>} : vector<16x128xi32>
      %22 = vector.broadcast %5 : i32 to vector<16x128xi32>
      %23 = arith.addi %22, %21 : vector<16x128xi32>
      %c16_i32_13 = arith.constant 16 : i32
      %24 = vector.broadcast %c16_i32_13 : i32 to vector<16x128xi32>
      %25 = arith.cmpi slt, %23, %24 : vector<16x128xi32>
      %cst = arith.constant 0.000000e+00 : f32
      %26 = vector.broadcast %cst : f32 to vector<16x128xf32>
      %27 = arith.select %25, %19, %26 : vector<16x128xi1>, vector<16x128xf32>
      %cst_14 = arith.constant 0.000000e+00 : f32
      %28 = vector.broadcast %cst_14 : f32 to vector<16x128xf32>
      %29 = arith.select %25, %20, %28 : vector<16x128xi1>, vector<16x128xf32>
      %30 = vector.shape_cast %27 : vector<16x128xf32> to vector<2x8x128xf32>
      %31 = vector.shape_cast %29 : vector<16x128xf32> to vector<2x8x128xf32>
      %c0_15 = arith.constant 0 : index
      %c0_16 = arith.constant 0 : index
      %32 = vector.load %arg5[%c0_15, %c0_16] : memref<8x128xf32, #tpu.memory_space<vmem>>, vector<8x128xf32>
      %33 = arith.mulf %30, %31 : vector<2x8x128xf32>
      %cst_17 = arith.constant dense<0.000000e+00> : vector<8x128xf32>
      %34 = vector.multi_reduction <add>, %33, %cst_17 [0] : vector<2x8x128xf32> to vector<8x128xf32>
      %35 = arith.addf %32, %34 : vector<8x128xf32>
      %c0_18 = arith.constant 0 : index
      %c0_19 = arith.constant 0 : index
      %36 = vector.load %arg5[%c0_18, %c0_19] : memref<8x128xf32, #tpu.memory_space<vmem>>, vector<8x128xf32>
      tpu.vector_store %arg5[%c0_18, %c0_19], %35 {strides = array<i32>} : memref<8x128xf32, #tpu.memory_space<vmem>>, vector<8x128xf32>,
      %c0_20 = arith.constant 0 : index
      %c0_21 = arith.constant 0 : index
      %37 = vector.load %arg6[%c0_20, %c0_21] : memref<8x128xf32, #tpu.memory_space<vmem>>, vector<8x128xf32>
      %cst_22 = arith.constant dense<0.000000e+00> : vector<8x128xf32>
      %38 = vector.multi_reduction <add>, %30, %cst_22 [0] : vector<2x8x128xf32> to vector<8x128xf32>
      %39 = arith.addf %37, %38 : vector<8x128xf32>
      %c0_23 = arith.constant 0 : index
      %c0_24 = arith.constant 0 : index
      %40 = vector.load %arg6[%c0_23, %c0_24] : memref<8x128xf32, #tpu.memory_space<vmem>>, vector<8x128xf32>
      tpu.vector_store %arg6[%c0_23, %c0_24], %39 {strides = array<i32>} : memref<8x128xf32, #tpu.memory_space<vmem>>, vector<8x128xf32>,
      %c0_25 = arith.constant 0 : index
      %c0_26 = arith.constant 0 : index
      %41 = vector.load %arg7[%c0_25, %c0_26] : memref<8x128xf32, #tpu.memory_space<vmem>>, vector<8x128xf32>
      %cst_27 = arith.constant dense<0.000000e+00> : vector<8x128xf32>
      %42 = vector.multi_reduction <add>, %31, %cst_27 [0] : vector<2x8x128xf32> to vector<8x128xf32>
      %43 = arith.addf %41, %42 : vector<8x128xf32>
      %c0_28 = arith.constant 0 : index
      %c0_29 = arith.constant 0 : index
      %44 = vector.load %arg7[%c0_28, %c0_29] : memref<8x128xf32, #tpu.memory_space<vmem>>, vector<8x128xf32>
      tpu.vector_store %arg7[%c0_28, %c0_29], %43 {strides = array<i32>} : memref<8x128xf32, #tpu.memory_space<vmem>>, vector<8x128xf32>,
    } else {
    }
    %c0_i32_8 = arith.constant 0 : i32
    %16 = arith.cmpi eq, %arg1, %c0_i32_8 : i32
    %17 = arith.extui %16 : i1 to i32
    %c0_i32_9 = arith.constant 0 : i32
    %18 = arith.cmpi ne, %17, %c0_i32_9 : i32
    scf.if %18 {
      %c0 = arith.constant 0 : index
      %c0_10 = arith.constant 0 : index
      %19 = vector.load %arg5[%c0, %c0_10] : memref<8x128xf32, #tpu.memory_space<vmem>>, vector<8x128xf32>
      %c0_11 = arith.constant 0 : index
      %c0_12 = arith.constant 0 : index
      %c0_13 = arith.constant 0 : index
      %c0_14 = arith.constant 0 : index
      %20 = vector.load %arg4[%c0_11, %c0_12, %c0_13, %c0_14] : memref<1x3x8x128xf32, #tpu.memory_space<vmem>>, vector<1x1x8x128xf32>
      %21 = vector.shape_cast %20 : vector<1x1x8x128xf32> to vector<8x128xf32>
      %22 = vector.shape_cast %19 : vector<8x128xf32> to vector<1x1x8x128xf32>
      tpu.vector_store %arg4[%c0_11, %c0_12, %c0_13, %c0_14], %22 {strides = array<i32>} : memref<1x3x8x128xf32, #tpu.memory_space<vmem>>, vector<1x1x8x128xf32>,
      %c0_15 = arith.constant 0 : index
      %c0_16 = arith.constant 0 : index
      %23 = vector.load %arg6[%c0_15, %c0_16] : memref<8x128xf32, #tpu.memory_space<vmem>>, vector<8x128xf32>
      %c0_17 = arith.constant 0 : index
      %c1 = arith.constant 1 : index
      %c0_18 = arith.constant 0 : index
      %c0_19 = arith.constant 0 : index
      %24 = vector.load %arg4[%c0_17, %c1, %c0_18, %c0_19] : memref<1x3x8x128xf32, #tpu.memory_space<vmem>>, vector<1x1x8x128xf32>
      %25 = vector.shape_cast %24 : vector<1x1x8x128xf32> to vector<8x128xf32>
      %26 = vector.shape_cast %23 : vector<8x128xf32> to vector<1x1x8x128xf32>
      tpu.vector_store %arg4[%c0_17, %c1, %c0_18, %c0_19], %26 {strides = array<i32>} : memref<1x3x8x128xf32, #tpu.memory_space<vmem>>, vector<1x1x8x128xf32>,
      %c0_20 = arith.constant 0 : index
      %c0_21 = arith.constant 0 : index
      %27 = vector.load %arg7[%c0_20, %c0_21] : memref<8x128xf32, #tpu.memory_space<vmem>>, vector<8x128xf32>
      %c0_22 = arith.constant 0 : index
      %c2 = arith.constant 2 : index
      %c0_23 = arith.constant 0 : index
      %c0_24 = arith.constant 0 : index
      %28 = vector.load %arg4[%c0_22, %c2, %c0_23, %c0_24] : memref<1x3x8x128xf32, #tpu.memory_space<vmem>>, vector<1x1x8x128xf32>
      %29 = vector.shape_cast %28 : vector<1x1x8x128xf32> to vector<8x128xf32>
      %30 = vector.shape_cast %27 : vector<8x128xf32> to vector<1x1x8x128xf32>
      tpu.vector_store %arg4[%c0_22, %c2, %c0_23, %c0_24], %30 {strides = array<i32>} : memref<1x3x8x128xf32, #tpu.memory_space<vmem>>, vector<1x1x8x128xf32>,
    } else {
    }
    return
  }
  func.func @transform_0(%arg0: i32, %arg1: i32) -> (i32, i32) {
    %c1_i32 = arith.constant 1 : i32
    %0 = arith.muli %arg0, %c1_i32 : i32
    %1 = arith.addi %0, %arg1 : i32
    %c0_i32 = arith.constant 0 : i32
    %2 = arith.minsi %1, %c0_i32 : i32
    %c0_i32_0 = arith.constant 0 : i32
    %c0_i32_1 = arith.constant 0 : i32
    return %2, %c0_i32_0 : i32, i32
  }
  func.func @transform_1(%arg0: i32, %arg1: i32) -> (i32, i32) {
    %c1_i32 = arith.constant 1 : i32
    %0 = arith.muli %arg0, %c1_i32 : i32
    %1 = arith.addi %0, %arg1 : i32
    %c0_i32 = arith.constant 0 : i32
    %2 = arith.minsi %1, %c0_i32 : i32
    %c0_i32_0 = arith.constant 0 : i32
    %c0_i32_1 = arith.constant 0 : i32
    return %2, %c0_i32_0 : i32, i32
  }
  func.func @transform_2(%arg0: i32, %arg1: i32) -> (i32, i32, i32, i32) {
    %c0_i32 = arith.constant 0 : i32
    %c0_i32_0 = arith.constant 0 : i32
    %c0_i32_1 = arith.constant 0 : i32
    %c0_i32_2 = arith.constant 0 : i32
    return %arg0, %c0_i32, %c0_i32_0, %c0_i32_1 : i32, i32, i32, i32
  }
}

</mosaic_0001>

<bundles_post_ra>
// kernel: tpu_custom_call.1
= control target key start
LH: loop header
LB: loop body
LE: loop exit
PB: predicated region body
PF: predicated region fallthrough
CT: control target
= control target key end

     0   :  { %7 = vsyncpa [#allocation6], 0  ;;  %s972_s0 = inlined_call_operand.hbm [shape: f32[16,128], index: 0, kind: input, shape index: {}]   ;;  %s973_s1 = inlined_call_operand.hbm [shape: f32[16,128], index: 1, kind: input, shape index: {}]   ;;  %s974_s2 = inlined_call_operand.hbm [shape: f32[2,3,8,128], index: 2, kind: output, shape index: {}]  }
   0x1   :  { %9 = vsyncpa [#allocation6 + $0x1], 0 }
   0x2   :  { %10 = vsyncpa [#allocation9], 0 }
   0x3   :  { %12 = vsyncpa [#allocation9 + $0x1], 0 }
   0x4   :  { %13 = vsyncpa [#allocation7], 0 }
   0x5   :  { %15 = vsyncpa [#allocation7 + $0x1], 0  ;;  %s743_s9 = smov 0   ;;  %s745_s10 = smov 0  }
   0x6   :  { %s747_s11 = smov 0   ;;  %s749_s12 = smov 0  }
   0x7   :  { %s751_s13 = smov 0   ;;  %s753_s14 = smov 0  }
   0x8   :  { %s755_s15 = smov 0   ;;  %s757_s16 = smov 0  }
   0x9 LB: > { %s437_s17 = sadd.s32 4294967295, %s718_s16   ;;  %s438_s18 = sadd.s32 4294967294, %s718_s16   ;;  %s718_s16 = sphi %s757_s16, %s21_s16   ;;  %s714_s15 = sphi %s755_s15, %s994_s15   ;;  %s710_s14 = sphi %s753_s14, %s993_s14   ;;  %s706_s13 = sphi %s751_s13, %s962_s13   ;;  %s702_s12 = sphi %s749_s12, %s992_s12   ;;  %s698_s11 = sphi %s747_s11, %s991_s11   ;;  %s694_s10 = sphi %s745_s10, %s990_s10   ;;  %s690_s9 = sphi %s743_s9, %s989_s9  }
   0xa   : > { %s33_s19 = sadd.s32 1, %s714_s15  ;;  %p687_p1 = scmp.ne.s32.totalorder %s706_s13, 0 }
   0xb   : > { %p35_p0 = scmp.ge.s32.totalorder %s33_s19, 2  ;;  %p54_p2 = scmp.eq.s32.totalorder %s718_s16, 0 }
   0xc   : > { %p59_p3 = scmp.ne.s32.totalorder %s706_s13, %s702_s12  ;;  %p60_p5 = scmp.eq.s32.totalorder %s437_s17, 0 }
   0xd   : > { %s996_s19 = smov (%p35_p0, %s33_s19), 0  ;;  %p789_p4 = por %p687_p1, %p54_p2 }
   0xe   : > { %p793_p6 = por %p60_p5, %p59_p3  ;;  %s101_s22 = ssub.s32 %s714_s15, %s996_s19 }
   0xf   : > { %p102_p7 = scmp.eq.s32.totalorder %s101_s22, 0  ;;  %s104_s23 = sadd.s32 1, %s698_s11 }
  0x10   : > { %s978_s21 = scalar_select %p793_p6, 1, 0 }
  0x11   : > { %s801_s24 = scalar_select %p102_p7, %s698_s11, %s104_s23  }
  0x12   : > { %p114_p8 = scmp.ne.s32.totalorder %s698_s11, %s694_s10  ;;  %p115_p9 = scmp.eq.s32.totalorder %s437_s17, 1 }
  0x13   : > { %p120_p10 = scmp.ne.s32.totalorder %s694_s10, %s690_s9  ;;  %p121_p11 = scmp.eq.s32.totalorder %s438_s18, 1 }
  0x14   : > { %p807_p12 = por %p115_p9, %p114_p8  ;;  %p478_p1 = scmp.lt.s32.totalorder %s718_s16, 2 }
  0x15   : > { %p812_p0 = por %p121_p11, %p120_p10  ;;  %s720_s27 = smov [#allocation5]  }
  0x16   : > { %s979_s25 = scalar_select %p807_p12, 1, 0 }
  0x17   : > { %s980_s26 = scalar_select %p812_p0, 1, 0 }
  0x18   : > { %s155_s28 = sshll.u32 %s720_s27, 4  ;;  %p819_p2 = pnand %p478_p1, %p789_p4  ;;  %s156_s28 = int_to_ptr.vmem [resolvable:$true] %s155_s28 }
  0x19   : > { %s557_s4 = scalar_lea.hbm %s972_s0, 256 }
  0x1a   : > { %p558_p3 = scmp.ne.s32.totalorder %s972_s0, %s557_s4  ;;  %p559_p5 = pneg %p819_p2 }
  0x1b   : > { %p564_p8 = scmp.lt.s32.totalorder %s557_s4, %s557_s4 }
  0x1c   : > { %p560_p7 = pnand %p559_p5, %p558_p3 }
  0x1e   : > { %p561_p4 = pneg %p560_p7 }
  0x20   : > { %p566_p9 = pnand %p564_p8, %p561_p4 }
  0x22   : > { %569 = shalt.err (!%p566_p9)
}
  0x23   : > { %s570_s7 = scalar_lea.vmem %s156_s28, 256  ;;  %s577_s8 = scalar_lea.vmem %s156_s28, 512 }
  0x24   : > { %p571_p10 = scmp.ne.s32.totalorder %s156_s28, %s570_s7  ;;  %p578_p13 = scmp.lt.s32.totalorder %s156_s28, %s156_s28 }
  0x25   : > { %p579_p0 = scmp.lt.s32.totalorder %s577_s8, %s570_s7 }
  0x26   : > { %p573_p11 = pnand %p571_p10, %p559_p5 }
  0x27   : > { %p580_p12 = por %p579_p0, %p578_p13 }
  0x28   : > { %p574_p1 = pneg %p573_p11 }
  0x2a   : > { %p581_p6 = pnand %p580_p12, %p574_p1 }
  0x2c   : > { %584 = shalt.err (!%p581_p6)
}
  0x2d   : > { %s721_s12 = smov 128   ;;  %s722_s17 = smov 8  }
  0x2e   : > { %470 = dma.hbm_to_vmem [thread:$0]  (!%p819_p2), %s972_s0, 256, %s156_s28, [#allocation6], %s721_s12, %s721_s12, %s722_s17  }
  0x2f   : > { %p447_p3 = scmp.ge.s32.totalorder %s718_s16, 1  ;;  %p187_p7 = scmp.lt.s32.totalorder %s718_s16, 3 }
  0x30   : > { %s723_s23 = smov [#allocation8]   ;;  %s585_s4 = scalar_lea.hbm %s973_s1, 256 }
  0x31   : > { %p844_p4 = pnand %p447_p3, %p187_p7  ;;  %s179_s27 = sshll.u32 %s723_s23, 4  ;;  %s180_s27 = int_to_ptr.vmem [resolvable:$true] %s179_s27 }
  0x32   : > { %p586_p6 = scmp.ne.s32.totalorder %s973_s1, %s585_s4  ;;  %p592_p0 = scmp.lt.s32.totalorder %s585_s4, %s585_s4 }
  0x33   : > { %s982_s22 = scalar_select %p844_p4, 1, 0 }
  0x34   : > { %p588_p12 = pnand %p586_p6, %p559_p5 }
  0x36   : > { %p589_p13 = pneg %p588_p12 }
  0x38   : > { %p594_p8 = pnand %p592_p0, %p589_p13 }
  0x3a   : > { %597 = shalt.err (!%p594_p8)
}
  0x3b   : > { %s598_s28 = scalar_lea.vmem %s180_s27, 256  ;;  %s605_s7 = scalar_lea.vmem %s180_s27, 512 }
  0x3c   : > { %p599_p9 = scmp.ne.s32.totalorder %s180_s27, %s598_s28  ;;  %p606_p1 = scmp.lt.s32.totalorder %s180_s27, %s180_s27 }
  0x3d   : > { %p607_p3 = scmp.lt.s32.totalorder %s605_s7, %s598_s28 }
  0x3e   : > { %p601_p10 = pnand %p599_p9, %p559_p5 }
  0x3f   : > { %p608_p7 = por %p607_p3, %p606_p1 }
  0x40   : > { %p602_p11 = pneg %p601_p10 }
  0x42   : > { %p609_p4 = pnand %p608_p7, %p602_p11 }
  0x44   : > { %612 = shalt.err (!%p609_p4)
}
  0x45   : > { %473 = dma.hbm_to_vmem [thread:$0]  (!%p819_p2), %s973_s1, 256, %s180_s27, [#allocation9], %s721_s12, %s721_s12, %s722_s17  }
  0x46   : > { %p983_p6 = scmp.ne.s32.totalorder %s982_s22, 0 }
  0x47   : > { %s193_s20 = sand.u32 (!%p983_p6), 1, %s706_s13   ;;  %p984_p5 = scmp.ne.s32.totalorder (!%p983_p6), %s978_s21, 0 }
  0x48   : > { %191 = sbr.rel (%p983_p6) target bundleno = 149 (0x95), region = 28  ;;  %s448_s23 = sshll.u32 (!%p983_p6), %s193_s20, 4 }
  0x49   : > { %s194_s30 = scalar_lea.sflag (!%p983_p6), [#allocation6], %s193_s20  ;;  %s868_s3 = scalar_lea.vmem (!%p983_p6), [#allocation5], %s448_s23 }
  0x4d   : > { %676 = dma.done.wait (%p984_p5), %s194_s30, 256  }
  0x4e   : > { %678 = vsyncadd (%p984_p5), %s194_s30, 4294967040  ;;  %s203_s29 = scalar_lea.sflag [#allocation9], %s193_s20  ;;  %s874_s4 = scalar_lea.vmem [#allocation8], %s448_s23 }
  0x4f   : > { %680 = dma.done.wait (%p984_p5), %s203_s29, 256  }
  0x50   : > { %682 = vsyncadd (%p984_p5), %s203_s29, 4294967040  ;;  %s229_s12 = sand.u32 1, %s694_s10   ;;  %s882_s17 = sshll.u32 %s710_s14, 4  ;;  %v724_v0 = vmov 0.0  }
  0x51   : > { %s459_s22 = smul.u32 24, %s229_s12  ;;  %244 = vst [vmem:[#allocation2] sm:$0xff] %v724_v0  ;;  %245 = vst [vmem:[#allocation3] sm:$0xff] %v724_v0  ;;  %s249_s27 = sadd.s32 16, %s882_s17 }
  0x52   : > { %246 = vst [vmem:[#allocation4] sm:$0xff] %v724_v0  ;;  %p889_p2 = scmp.gt.s32.totalorder %s249_s27, 16 }
  0x53   : > { %s887_s5 = scalar_lea.vmem [#allocation10], %s459_s22 }
  0x54   : > { %253 = sbr.rel (%p889_p2) target bundleno = 98 (0x62), region = 44 }
  0x59   : > { %v254_v1 = vld [vmem:[%s868_s3] sm:$0xff]  ;;  %v255_v2 = vld [vmem:[%s868_s3 + $0x8] sm:$0xff] }
  0x5a   : > { %v256_v3 = vld [vmem:[%s874_s4] sm:$0xff]  ;;  %v257_v4 = vld [vmem:[%s874_s4 + $0x8] sm:$0xff]  ;;  %v265_v7 = vadd.f32 %v255_v2, %v254_v1 }
  0x5b   : > { %v259_v5 = vmul.f32 %v256_v3, %v254_v1  ;;  %v264_v6 = vld [vmem:[#allocation3] sm:$0xff]  ;;  %v260_v8 = vmul.f32 %v257_v4, %v255_v2  ;;  %v268_v9 = vld [vmem:[#allocation4] sm:$0xff]  ;;  %v269_v10 = vadd.f32 %v257_v4, %v256_v3  ;;  %v258_v11 = vld [vmem:[#allocation2] sm:$0xff] }
  0x5c   : > { %v266_v12 = vadd.f32 %v265_v7, %v264_v6 }
  0x5d   : > { %v261_v13 = vadd.f32 %v260_v8, %v259_v5  ;;  %v270_v14 = vadd.f32 %v269_v10, %v268_v9 }
  0x5e   : > { %267 = vst [vmem:[#allocation3] sm:$0xff] %v266_v12 }
  0x5f   : > { %v262_v15 = vadd.f32 %v261_v13, %v258_v11  ;;  %271 = vst [vmem:[#allocation4] sm:$0xff] %v270_v14 }
  0x61   : > { %263 = vst [vmem:[#allocation2] sm:$0xff] %v262_v15 }
  0x62 PF: > { %p272_p4 = scmp.lt.s32.totalorder %s882_s17, 16 }
  0x64   : > { %p274_p12 = pnand %p889_p2, %p272_p4 }
  0x66   : > { %277 = sbr.rel (%p274_p12) target bundleno = 124 (0x7c), region = 48 }
  0x6b   : > { %v282_v16 = vlaneseq  ;;  %v285_v17 = vstv %s882_s17  ;;  %v278_v19 = vld [vmem:[%s868_s3] sm:$0xff]  ;;  %v279_v23 = vld [vmem:[%s868_s3 + $0x8] sm:$0xff] }
  0x6c   : > { %v280_v20 = vld [vmem:[%s874_s4] sm:$0xff]  ;;  %v281_v24 = vld [vmem:[%s874_s4 + $0x8] sm:$0xff] }
  0x6d   : > { %v283_v18 = vshrl.u32 %v282_v16, 7  ;;  %v300_v31 = vld [vmem:[#allocation3] sm:$0xff]  ;;  %v304_v32 = vld [vmem:[#allocation4] sm:$0xff]  ;;  %v294_v36 = vld [vmem:[#allocation2] sm:$0xff] }
  0x6f   : > { %v284_v21 = vadd.s32 8, %v283_v18  ;;  %v286_v22 = vadd.s32 %v285_v17, %v283_v18 }
  0x71   : > { %v287_v25 = vadd.s32 %v285_v17, %v284_v21  ;;  %vm288_vm0 = vcmp.lt.s32.totalorder %v286_v22, 16 }
  0x72   : > { %v290_v26 = vsel %vm288_vm0, %v278_v19, 0.0  ;;  %v292_v27 = vsel %vm288_vm0, %v280_v20, 0.0 }
  0x73   : > { %vm289_vm1 = vcmp.lt.s32.totalorder %v287_v25, 16  ;;  %v295_v28 = vmul.f32 %v292_v27, %v290_v26 }
  0x74   : > { %v291_v29 = vsel %vm289_vm1, %v279_v23, 0.0  ;;  %v293_v30 = vsel %vm289_vm1, %v281_v24, 0.0 }
  0x75   : > { %v296_v33 = vmul.f32 %v293_v30, %v291_v29  ;;  %v301_v34 = vadd.f32 %v291_v29, %v290_v26  ;;  %v305_v35 = vadd.f32 %v293_v30, %v292_v27 }
  0x77   : > { %v297_v37 = vadd.f32 %v296_v33, %v295_v28  ;;  %v302_v38 = vadd.f32 %v301_v34, %v300_v31  ;;  %v306_v39 = vadd.f32 %v305_v35, %v304_v32 }
  0x79   : > { %v298_v40 = vadd.f32 %v297_v37, %v294_v36  ;;  %303 = vst [vmem:[#allocation3] sm:$0xff] %v302_v38  ;;  %307 = vst [vmem:[#allocation4] sm:$0xff] %v306_v39 }
  0x7b   : > { %299 = vst [vmem:[#allocation2] sm:$0xff] %v298_v40 }
  0x7c PF: > { %s460_s21 = smul.u32 384, %s710_s14  ;;  %s333_s28 = sshll.u32 %s887_s5, 4  ;;  %s917_s28 = int_to_ptr.vmem [resolvable:$true] %s333_s28 }
  0x7d   : > { %s921_s20 = scalar_lea.sflag [#allocation7], %s229_s12  ;;  %s613_s23 = scalar_lea.vmem %s917_s28, 384 }
  0x7e   : > { %s915_s18 = scalar_lea.hbm %s974_s2, %s460_s21  ;;  %p614_p13 = scmp.ne.s32.totalorder %s917_s28, %s613_s23 }
  0x7f   : > { %p986_p0 = scmp.ne.s32.totalorder %s979_s25, 0  ;;  %s725_s14 = smov [#allocation10]  }
  0x80   : > { %v313_v42 = vld [vmem:[#allocation3] sm:$0xff]  ;;  %v316_v43 = vld [vmem:[#allocation4] sm:$0xff]  ;;  %s617_s30 = sshll.u32 %s725_s14, 4  ;;  %s618_s30 = int_to_ptr.vmem [resolvable:$false] %s617_s30 }
  0x81   : > { %452 = vst [vmem:[%s887_s5 + $0x8] sm:$0xff] %v313_v42  ;;  %453 = vst [vmem:[%s887_s5 + $0x10] sm:$0xff] %v316_v43  ;;  %p615_p8 = pnand %p614_p13, %p986_p0  ;;  %s619_s3 = scalar_lea.vmem %s618_s30, 768 }
  0x82   : > { %v311_v41 = vld [vmem:[#allocation2] sm:$0xff]  ;;  %p620_p10 = scmp.lt.s32.totalorder %s917_s28, %s618_s30  ;;  %p621_p11 = scmp.lt.s32.totalorder %s619_s3, %s613_s23 }
  0x83   : > { %312 = vst [vmem:[%s887_s5] sm:$0xff] %v311_v41  ;;  %p616_p9 = pneg %p615_p8 }
  0x84   : > { %p622_p1 = por %p621_p11, %p620_p10 }
  0x86   : > { %p623_p3 = pnand %p622_p1, %p616_p9 }
  0x88   : > { %626 = shalt.err (!%p623_p3)
}
  0x89   : > { %s627_s29 = scalar_lea.hbm %s915_s18, 384  ;;  %s631_s17 = scalar_lea.hbm %s974_s2, 768 }
  0x8a   : > { %p628_p7 = scmp.ne.s32.totalorder %s915_s18, %s627_s29  ;;  %p632_p2 = scmp.lt.s32.totalorder %s915_s18, %s974_s2 }
  0x8b   : > { %p633_p4 = scmp.lt.s32.totalorder %s631_s17, %s627_s29 }
  0x8c   : > { %p629_p6 = pnand %p628_p7, %p986_p0 }
  0x8d   : > { %p634_p12 = por %p633_p4, %p632_p2 }
  0x8e   : > { %p630_p5 = pneg %p629_p6 }
  0x90   : > { %p635_p13 = pnand %p634_p12, %p630_p5 }
  0x92   : > { %638 = shalt.err (!%p635_p13)
}
  0x93   : > { %s726_s5 = smov 128   ;;  %s727_s6 = smov 8  }
  0x94   : > { %465 = dma.vmem_to_hbm [thread:$0]  (%p986_p0), %s917_s28, 384, %s915_s18, %s921_s20, %s726_s5, %s726_s5, %s727_s6  }
  0x95 PF: > { %s348_s21 = sand.u32 1, %s690_s9   ;;  %p987_p8 = scmp.ne.s32.totalorder %s980_s26, 0 }
  0x96   : > { %p988_p9 = scmp.ge.s32.totalorder %s718_s16, 2  ;;  %s349_s7 = scalar_lea.sflag [#allocation7], %s348_s21 }
  0x98   : > { %p475_p10 = pnand %p988_p9, %p987_p8 }
  0x9a   : > { %p476_p11 = pneg %p475_p10 }
  0x9c   : > { %684 = dma.done.wait (%p476_p11), %s349_s7, 384  }
  0x9d   : > { %686 = vsyncadd (%p476_p11), %s349_s7, 4294966912  ;;  %s21_s16 = sadd.s32 1, %s718_s16   ;;  %s989_s9 = smov %s694_s10 }
  0x9e   : > { %p18_p1 = scmp.ge.s32.totalorder %s21_s16, 4   ;;  %s990_s10 = smov %s698_s11 }
  0x9f   : > { %s991_s11 = smov %s801_s24  ;;  %s992_s12 = smov %s706_s13 }
  0xa0   : > { %s962_s13 = smov 0   ;;  %s993_s14 = smov %s714_s15 }
  0xa1   : > { %s994_s15 = smov %s996_s19  ;;  %20 = sbr.rel (!%p18_p1) target bundleno = 9 (0x9), region = 104 }
  0xa6   :  { %354 = vsyncpa [#allocation6], 1 }
  0xa7   :  { %356 = vsyncpa [#allocation6 + $0x1], 1 }
  0xa8   :  { %357 = vsyncpa [#allocation9], 1 }
  0xa9   :  { %359 = vsyncpa [#allocation9 + $0x1], 1 }
  0xaa   :  { %360 = vsyncpa [#allocation7], 1 }
  0xab   :  { %362 = vsyncpa [#allocation7 + $0x1], 1 }

</bundles_post_ra>
